<compile_context>
chip_gen: v5e
topology: v5e:2x2
jax: 0.10.0
libtpu: 0.0.40
codegen_flags: <defaults>
</compile_context>

<pallas_src>
import functools

import jax
import jax.numpy as jnp
from jax import lax
from jax.experimental import pallas as pl
from jax.experimental.pallas import tpu as pltpu

N_SUBSTEPS = 8  # fixed RK4 sub-steps per output time interval


def _node_rk4_kernel(x0_ref, wi_bd_ref, bi_ref, w_bd_ref, b_eff_ref, z_out_ref):
    """RK4 integration of dz/dt = z @ W_eff + b_eff for one batch group.

    Per-group ref shapes (Bg = batches in this group, BgH = Bg*H, BgC = Bg*C):
      x0_ref    : (1, 1, BgC)    X.evaluate(0), batches flattened along lanes
      wi_bd_ref : (BgC, BgH)     block-diag(initial.weight), shared by all groups
      bi_ref    : (1, BgH)       initial.bias tiled per batch
      w_bd_ref  : (1, BgH, BgH)  block-diag of per-batch folded vector-field weights
      b_eff_ref : (1, 1, BgH)    per-batch folded vector-field bias
      z_out_ref : (1, T, BgH)    hidden trajectory (time-major, lanes = batch x hidden)
    """
    T = z_out_ref.shape[1]

    # Folded CDE vector field (constant dX absorbed into the weights):
    #   dz/dt = reshape(z @ Wf + bf, (., H, C)) @ dX  ==  z_flat @ W_bd + b_eff
    w = w_bd_ref[0]                                   # (BgH, BgH), held in vregs
    b = b_eff_ref[0]                                  # (1, BgH)

    # z0 = initial(X.evaluate(ts[0])) for every batch of this group, lane-flattened.
    z0 = (jnp.dot(x0_ref[0], wi_bd_ref[...], preferred_element_type=jnp.float32)
          + bi_ref[...])                              # (1, BgH)
    z_out_ref[0, pl.ds(0, 1), :] = z0

    dt = 1.0 / ((T - 1) * N_SUBSTEPS)

    def vf(z):
        # One MXU push per k-evaluation.
        return jnp.dot(z, w, preferred_element_type=jnp.float32) + b

    @pl.loop(0, T - 1)
    def _(t):
        # Carry z through the trajectory buffer: one VMEM read + one write per output
        # interval; the unrolled RK4 substeps below stay entirely in vregs.
        z = z_out_ref[0, pl.ds(t, 1), :]              # (1, BgH)
        for _ in range(N_SUBSTEPS):                   # trace-time unrolled straight line
            k1 = vf(z)
            k2 = vf(z + (0.5 * dt) * k1)
            k3 = vf(z + (0.5 * dt) * k2)
            k4 = vf(z + dt * k3)
            z = z + (dt / 6.0) * (k1 + 2.0 * k2 + 2.0 * k3 + k4)
        z_out_ref[0, pl.ds(t + 1, 1), :] = z


def _num_batch_groups(batch):
    """Split independent per-batch trajectories across TensorCores on v7x only."""
    try:
        kind = jax.devices()[0].device_kind.lower()
    except Exception:
        return 1
    if "v7" in kind and batch % 2 == 0:
        return 2          # v7x: 2 TensorCores per chip -> 2 parallel batch groups
    return 1              # v5e / v6e: single TC, keep a single grid point


def init_params(key, input_channels, hidden_dim, num_activities):
    """Deterministic PyTorch-Linear-style init (uniform +-1/sqrt(fan_in))."""
    def linear(k, fan_in, fan_out):
        k1, k2 = jax.random.split(k)
        bound = 1.0 / float(fan_in) ** 0.5
        w = jax.random.uniform(k1, (fan_in, fan_out), jnp.float32, -bound, bound)
        b = jax.random.uniform(k2, (1, fan_out), jnp.float32, -bound, bound)
        return w, b

    keys = jax.random.split(key, 8)
    p = {}
    p['wi'], p['bi'] = linear(keys[0], input_channels, hidden_dim)               # initial
    p['wf'], p['bf'] = linear(keys[1], hidden_dim, hidden_dim * input_channels)  # CDEFunc.linear
    p['wa1'], p['ba1'] = linear(keys[2], hidden_dim, hidden_dim)                 # act_head[0]
    p['wa2'], p['ba2'] = linear(keys[3], hidden_dim, num_activities)             # act_head[2]
    p['wt1'], p['bt1'] = linear(keys[4], hidden_dim, hidden_dim)                 # ttne_head[0]
    p['wt2'], p['bt2'] = linear(keys[5], hidden_dim, 1)                          # ttne_head[2]
    p['wr1'], p['br1'] = linear(keys[6], hidden_dim, hidden_dim)                 # rrt_head[0]
    p['wr2'], p['br2'] = linear(keys[7], hidden_dim, 1)                          # rrt_head[2]
    return p


@functools.partial(jax.jit, static_argnames=("num_groups",))
def _forward_impl(data, params, num_groups):
    B, T, C = data.shape
    H = params['wi'].shape[1]
    G = num_groups
    Bg = B // G
    hi = lax.Precision.HIGHEST

    x0 = data[:, 0, :]                       # X.evaluate(ts[0])
    dX = data[:, 1, :] - data[:, 0, :]       # X.derivative(t): constant over the solve
    # (torchcde linear interpolation uses default knots 0..T-1 while ts = linspace(0,1,T),
    #  so the whole integration sits inside the first knot interval.)

    # --- fold the constant dX into per-batch effective vector-field weights -------------
    wf3 = params['wf'].reshape(H, H, C)
    W_eff = jnp.einsum('jhc,bc->bjh', wf3, dX, precision=hi)                     # (B, H, H)
    b_eff = jnp.einsum('hc,bc->bh', params['bf'].reshape(H, C), dX, precision=hi)  # (B, H)

    # Pack each group's Bg per-batch (H, H) blocks into one block-diagonal matrix so the
    # per-k-eval vector field inside the kernel is a single MXU matmul.
    eye_bg = jnp.eye(Bg, dtype=jnp.float32)
    W_bd = jnp.einsum('gbjh,bd->gbjdh', W_eff.reshape(G, Bg, H, H), eye_bg
                      ).reshape(G, Bg * H, Bg * H)
    b_eff_g = b_eff.reshape(G, 1, Bg * H)
    Wi_bd = jnp.einsum('ch,bd->bcdh', params['wi'], eye_bg).reshape(Bg * C, Bg * H)
    bi_flat = jnp.tile(params['bi'], (1, Bg))                                    # (1, Bg*H)
    x0_g = x0.reshape(G, 1, Bg * C)

    # --- Pallas kernel: z0 projection + RK4 integration of the CDE ----------------------
    z_traj = pl.pallas_call(
        _node_rk4_kernel,
        out_shape=jax.ShapeDtypeStruct((G, T, Bg * H), jnp.float32),
        grid=(G,),
        in_specs=[
            pl.BlockSpec((1, 1, Bg * C), lambda g: (g, 0, 0)),        # x0 (per group)
            pl.BlockSpec((Bg * C, Bg * H), lambda g: (0, 0)),         # Wi block-diag (shared)
            pl.BlockSpec((1, Bg * H), lambda g: (0, 0)),              # bi tiled (shared)
            pl.BlockSpec((1, Bg * H, Bg * H), lambda g: (g, 0, 0)),   # W_eff block-diag
            pl.BlockSpec((1, 1, Bg * H), lambda g: (g, 0, 0)),        # b_eff
        ],
        out_specs=pl.BlockSpec((1, T, Bg * H), lambda g: (g, 0, 0)),
        compiler_params=pltpu.CompilerParams(
            dimension_semantics=("parallel",)),
    )(x0_g, Wi_bd, bi_flat, W_bd, b_eff_g)

    # (G, T, Bg*H) -> (B, T, H)
    z_t = z_traj.reshape(G, T, Bg, H).transpose(0, 2, 1, 3).reshape(B, T, H)

    # --- output heads: one-shot small matmuls on the full trajectory (out of the loop) --
    def mlp_head(x, w1, b1, w2, b2):
        h = jnp.maximum(jnp.dot(x, w1, precision=hi) + b1, 0.0)
        return jnp.dot(h, w2, precision=hi) + b2

    act_logits = jnp.argmax(
        mlp_head(z_t, params['wa1'], params['ba1'], params['wa2'], params['ba2']), axis=-1)
    ttne_pred = mlp_head(z_t, params['wt1'], params['bt1'],
                         params['wt2'], params['bt2'])[..., 0]
    rrt_pred = mlp_head(z_t[:, 0, :], params['wr1'], params['br1'],
                        params['wr2'], params['br2'])[:, 0]
    return act_logits, ttne_pred, rrt_pred


def node_no_context_forward(data, params):
    """Eval-mode forward of NODE_no_context. `data`: (B, T, C) float32."""
    num_groups = _num_batch_groups(data.shape[0])
    return _forward_impl(data, params, num_groups=num_groups)


if __name__ == "__main__":
    B, T, C, H, A = 2, 8, 4, 32, 6   # batch, seq, input_channels, hidden_dim, num_activities
    key = jax.random.PRNGKey(0)
    k_data, k_params = jax.random.split(key)
    data = jax.random.normal(k_data, (B, T, C), dtype=jnp.float32)
    pad = jnp.zeros((B, T), dtype=jnp.float32)  # unused by the eval forward (signature parity)
    params = init_params(k_params, C, H, A)

    act_logits, ttne_pred, rrt_pred = node_no_context_forward(data, params)
    jax.block_until_ready((act_logits, ttne_pred, rrt_pred))
    assert act_logits.shape == (B, T)
    assert ttne_pred.shape == (B, T)
    assert rrt_pred.shape == (B,)
    print("KERNEL_OK")
</pallas_src>

<mosaic_0001>
module attributes {stable_mosaic.version = 11 : i64} {
  func.func @_node_rk4_kernel(%arg0: i32, %arg1: memref<1x1x8xf32, #tpu.memory_space<vmem>>, %arg2: memref<8x64xf32, #tpu.memory_space<vmem>>, %arg3: memref<1x64xf32, #tpu.memory_space<vmem>>, %arg4: memref<1x64x64xf32, #tpu.memory_space<vmem>>, %arg5: memref<1x1x64xf32, #tpu.memory_space<vmem>>, %arg6: memref<1x8x64xf32, #tpu.memory_space<vmem>>) attributes {dimension_semantics = [#tpu.dimension_semantics<parallel>], iteration_bounds = array<i64: 1>, scalar_prefetch = 0 : i64, scratch_operands = 0 : i64, tpu.core_type = #tpu.core_type<tc>, window_params = [{transform_indices = @transform_0, window_bounds = array<i64: 1, 1, 8>}, {pipeline_mode = #tpu.pipeline_mode<synchronous>, transform_indices = @transform_1, window_bounds = array<i64: 8, 64>}, {pipeline_mode = #tpu.pipeline_mode<synchronous>, transform_indices = @transform_2, window_bounds = array<i64: 1, 64>}, {transform_indices = @transform_3, window_bounds = array<i64: 1, 64, 64>}, {transform_indices = @transform_4, window_bounds = array<i64: 1, 1, 64>}, {transform_indices = @transform_5, window_bounds = array<i64: 1, 8, 64>}]} {
    %c0 = arith.constant 0 : index
    %c0_0 = arith.constant 0 : index
    %c0_1 = arith.constant 0 : index
    %0 = vector.load %arg4[%c0, %c0_0, %c0_1] : memref<1x64x64xf32, #tpu.memory_space<vmem>>, vector<1x64x64xf32>
    %1 = vector.shape_cast %0 : vector<1x64x64xf32> to vector<64x64xf32>
    %c0_2 = arith.constant 0 : index
    %c0_3 = arith.constant 0 : index
    %c0_4 = arith.constant 0 : index
    %2 = vector.load %arg5[%c0_2, %c0_3, %c0_4] : memref<1x1x64xf32, #tpu.memory_space<vmem>>, vector<1x1x64xf32>
    %3 = vector.shape_cast %2 : vector<1x1x64xf32> to vector<1x64xf32>
    %c0_5 = arith.constant 0 : index
    %c0_6 = arith.constant 0 : index
    %c0_7 = arith.constant 0 : index
    %4 = vector.load %arg1[%c0_5, %c0_6, %c0_7] : memref<1x1x8xf32, #tpu.memory_space<vmem>>, vector<1x1x8xf32>
    %5 = vector.shape_cast %4 : vector<1x1x8xf32> to vector<1x8xf32>
    %c0_8 = arith.constant 0 : index
    %c0_9 = arith.constant 0 : index
    %6 = vector.load %arg2[%c0_8, %c0_9] : memref<8x64xf32, #tpu.memory_space<vmem>>, vector<8x64xf32>
    %cst = arith.constant dense<0.000000e+00> : vector<1x64xf32>
    %7 = tpu.matmul %5, %6, %cst {dimension_numbers = #tpu.dot_dimension_numbers<[1], [0], [0], [1], [0, 0, 1, 1], [], []>} : vector<1x8xf32>, vector<8x64xf32>, vector<1x64xf32> -> vector<1x64xf32>
    %c0_10 = arith.constant 0 : index
    %c0_11 = arith.constant 0 : index
    %8 = vector.load %arg3[%c0_10, %c0_11] : memref<1x64xf32, #tpu.memory_space<vmem>>, vector<1x64xf32>
    %9 = arith.addf %7, %8 : vector<1x64xf32>
    %c0_12 = arith.constant 0 : index
    %c0_13 = arith.constant 0 : index
    %c0_14 = arith.constant 0 : index
    %10 = vector.load %arg6[%c0_12, %c0_13, %c0_14] : memref<1x8x64xf32, #tpu.memory_space<vmem>>, vector<1x1x64xf32>
    %11 = vector.shape_cast %10 : vector<1x1x64xf32> to vector<1x64xf32>
    %12 = vector.shape_cast %9 : vector<1x64xf32> to vector<1x1x64xf32>
    tpu.vector_store %arg6[%c0_12, %c0_13, %c0_14], %12 {strides = array<i32>} : memref<1x8x64xf32, #tpu.memory_space<vmem>>, vector<1x1x64xf32>,
    %c0_i32 = arith.constant 0 : i32
    %c7_i32 = arith.constant 7 : i32
    %13 = arith.addi %c0_i32, %c7_i32 : i32
    %c1_i32 = arith.constant 1 : i32
    scf.for %arg7 = %c0_i32 to %13 step %c1_i32  : i32 {
      %c1_i32_16 = arith.constant 1 : i32
      %14 = arith.muli %arg7, %c1_i32_16 : i32
      %c0_i32_17 = arith.constant 0 : i32
      %15 = arith.addi %c0_i32_17, %14 : i32
      %c0_18 = arith.constant 0 : index
      %16 = arith.index_cast %15 : i32 to index
      %c0_19 = arith.constant 0 : index
      %17 = vector.load %arg6[%c0_18, %16, %c0_19] : memref<1x8x64xf32, #tpu.memory_space<vmem>>, vector<1x1x64xf32>
      %18 = vector.shape_cast %17 : vector<1x1x64xf32> to vector<1x64xf32>
      %cst_20 = arith.constant dense<0.000000e+00> : vector<1x64xf32>
      %19 = tpu.matmul %18, %1, %cst_20 {dimension_numbers = #tpu.dot_dimension_numbers<[1], [0], [0], [1], [0, 0, 1, 1], [], []>} : vector<1x64xf32>, vector<64x64xf32>, vector<1x64xf32> -> vector<1x64xf32>
      %20 = arith.addf %19, %3 : vector<1x64xf32>
      %cst_21 = arith.constant 0.00892857183 : f32
      %21 = vector.broadcast %cst_21 : f32 to vector<1x64xf32>
      %22 = arith.mulf %21, %20 : vector<1x64xf32>
      %23 = arith.addf %18, %22 : vector<1x64xf32>
      %cst_22 = arith.constant dense<0.000000e+00> : vector<1x64xf32>
      %24 = tpu.matmul %23, %1, %cst_22 {dimension_numbers = #tpu.dot_dimension_numbers<[1], [0], [0], [1], [0, 0, 1, 1], [], []>} : vector<1x64xf32>, vector<64x64xf32>, vector<1x64xf32> -> vector<1x64xf32>
      %25 = arith.addf %24, %3 : vector<1x64xf32>
      %cst_23 = arith.constant 0.00892857183 : f32
      %26 = vector.broadcast %cst_23 : f32 to vector<1x64xf32>
      %27 = arith.mulf %26, %25 : vector<1x64xf32>
      %28 = arith.addf %18, %27 : vector<1x64xf32>
      %cst_24 = arith.constant dense<0.000000e+00> : vector<1x64xf32>
      %29 = tpu.matmul %28, %1, %cst_24 {dimension_numbers = #tpu.dot_dimension_numbers<[1], [0], [0], [1], [0, 0, 1, 1], [], []>} : vector<1x64xf32>, vector<64x64xf32>, vector<1x64xf32> -> vector<1x64xf32>
      %30 = arith.addf %29, %3 : vector<1x64xf32>
      %cst_25 = arith.constant 0.0178571437 : f32
      %31 = vector.broadcast %cst_25 : f32 to vector<1x64xf32>
      %32 = arith.mulf %31, %30 : vector<1x64xf32>
      %33 = arith.addf %18, %32 : vector<1x64xf32>
      %cst_26 = arith.constant dense<0.000000e+00> : vector<1x64xf32>
      %34 = tpu.matmul %33, %1, %cst_26 {dimension_numbers = #tpu.dot_dimension_numbers<[1], [0], [0], [1], [0, 0, 1, 1], [], []>} : vector<1x64xf32>, vector<64x64xf32>, vector<1x64xf32> -> vector<1x64xf32>
      %35 = arith.addf %34, %3 : vector<1x64xf32>
      %cst_27 = arith.constant 2.000000e+00 : f32
      %36 = vector.broadcast %cst_27 : f32 to vector<1x64xf32>
      %37 = arith.mulf %36, %25 : vector<1x64xf32>
      %38 = arith.addf %20, %37 : vector<1x64xf32>
      %cst_28 = arith.constant 2.000000e+00 : f32
      %39 = vector.broadcast %cst_28 : f32 to vector<1x64xf32>
      %40 = arith.mulf %39, %30 : vector<1x64xf32>
      %41 = arith.addf %38, %40 : vector<1x64xf32>
      %42 = arith.addf %41, %35 : vector<1x64xf32>
      %cst_29 = arith.constant 0.00297619053 : f32
      %43 = vector.broadcast %cst_29 : f32 to vector<1x64xf32>
      %44 = arith.mulf %43, %42 : vector<1x64xf32>
      %45 = arith.addf %18, %44 : vector<1x64xf32>
      %cst_30 = arith.constant dense<0.000000e+00> : vector<1x64xf32>
      %46 = tpu.matmul %45, %1, %cst_30 {dimension_numbers = #tpu.dot_dimension_numbers<[1], [0], [0], [1], [0, 0, 1, 1], [], []>} : vector<1x64xf32>, vector<64x64xf32>, vector<1x64xf32> -> vector<1x64xf32>
      %47 = arith.addf %46, %3 : vector<1x64xf32>
      %cst_31 = arith.constant 0.00892857183 : f32
      %48 = vector.broadcast %cst_31 : f32 to vector<1x64xf32>
      %49 = arith.mulf %48, %47 : vector<1x64xf32>
      %50 = arith.addf %45, %49 : vector<1x64xf32>
      %cst_32 = arith.constant dense<0.000000e+00> : vector<1x64xf32>
      %51 = tpu.matmul %50, %1, %cst_32 {dimension_numbers = #tpu.dot_dimension_numbers<[1], [0], [0], [1], [0, 0, 1, 1], [], []>} : vector<1x64xf32>, vector<64x64xf32>, vector<1x64xf32> -> vector<1x64xf32>
      %52 = arith.addf %51, %3 : vector<1x64xf32>
      %cst_33 = arith.constant 0.00892857183 : f32
      %53 = vector.broadcast %cst_33 : f32 to vector<1x64xf32>
      %54 = arith.mulf %53, %52 : vector<1x64xf32>
      %55 = arith.addf %45, %54 : vector<1x64xf32>
      %cst_34 = arith.constant dense<0.000000e+00> : vector<1x64xf32>
      %56 = tpu.matmul %55, %1, %cst_34 {dimension_numbers = #tpu.dot_dimension_numbers<[1], [0], [0], [1], [0, 0, 1, 1], [], []>} : vector<1x64xf32>, vector<64x64xf32>, vector<1x64xf32> -> vector<1x64xf32>
      %57 = arith.addf %56, %3 : vector<1x64xf32>
      %cst_35 = arith.constant 0.0178571437 : f32
      %58 = vector.broadcast %cst_35 : f32 to vector<1x64xf32>
      %59 = arith.mulf %58, %57 : vector<1x64xf32>
      %60 = arith.addf %45, %59 : vector<1x64xf32>
      %cst_36 = arith.constant dense<0.000000e+00> : vector<1x64xf32>
      %61 = tpu.matmul %60, %1, %cst_36 {dimension_numbers = #tpu.dot_dimension_numbers<[1], [0], [0], [1], [0, 0, 1, 1], [], []>} : vector<1x64xf32>, vector<64x64xf32>, vector<1x64xf32> -> vector<1x64xf32>
      %62 = arith.addf %61, %3 : vector<1x64xf32>
      %cst_37 = arith.constant 2.000000e+00 : f32
      %63 = vector.broadcast %cst_37 : f32 to vector<1x64xf32>
      %64 = arith.mulf %63, %52 : vector<1x64xf32>
      %65 = arith.addf %47, %64 : vector<1x64xf32>
      %cst_38 = arith.constant 2.000000e+00 : f32
      %66 = vector.broadcast %cst_38 : f32 to vector<1x64xf32>
      %67 = arith.mulf %66, %57 : vector<1x64xf32>
      %68 = arith.addf %65, %67 : vector<1x64xf32>
      %69 = arith.addf %68, %62 : vector<1x64xf32>
      %cst_39 = arith.constant 0.00297619053 : f32
      %70 = vector.broadcast %cst_39 : f32 to vector<1x64xf32>
      %71 = arith.mulf %70, %69 : vector<1x64xf32>
      %72 = arith.addf %45, %71 : vector<1x64xf32>
      %cst_40 = arith.constant dense<0.000000e+00> : vector<1x64xf32>
      %73 = tpu.matmul %72, %1, %cst_40 {dimension_numbers = #tpu.dot_dimension_numbers<[1], [0], [0], [1], [0, 0, 1, 1], [], []>} : vector<1x64xf32>, vector<64x64xf32>, vector<1x64xf32> -> vector<1x64xf32>
      %74 = arith.addf %73, %3 : vector<1x64xf32>
      %cst_41 = arith.constant 0.00892857183 : f32
      %75 = vector.broadcast %cst_41 : f32 to vector<1x64xf32>
      %76 = arith.mulf %75, %74 : vector<1x64xf32>
      %77 = arith.addf %72, %76 : vector<1x64xf32>
      %cst_42 = arith.constant dense<0.000000e+00> : vector<1x64xf32>
      %78 = tpu.matmul %77, %1, %cst_42 {dimension_numbers = #tpu.dot_dimension_numbers<[1], [0], [0], [1], [0, 0, 1, 1], [], []>} : vector<1x64xf32>, vector<64x64xf32>, vector<1x64xf32> -> vector<1x64xf32>
      %79 = arith.addf %78, %3 : vector<1x64xf32>
      %cst_43 = arith.constant 0.00892857183 : f32
      %80 = vector.broadcast %cst_43 : f32 to vector<1x64xf32>
      %81 = arith.mulf %80, %79 : vector<1x64xf32>
      %82 = arith.addf %72, %81 : vector<1x64xf32>
      %cst_44 = arith.constant dense<0.000000e+00> : vector<1x64xf32>
      %83 = tpu.matmul %82, %1, %cst_44 {dimension_numbers = #tpu.dot_dimension_numbers<[1], [0], [0], [1], [0, 0, 1, 1], [], []>} : vector<1x64xf32>, vector<64x64xf32>, vector<1x64xf32> -> vector<1x64xf32>
      %84 = arith.addf %83, %3 : vector<1x64xf32>
      %cst_45 = arith.constant 0.0178571437 : f32
      %85 = vector.broadcast %cst_45 : f32 to vector<1x64xf32>
      %86 = arith.mulf %85, %84 : vector<1x64xf32>
      %87 = arith.addf %72, %86 : vector<1x64xf32>
      %cst_46 = arith.constant dense<0.000000e+00> : vector<1x64xf32>
      %88 = tpu.matmul %87, %1, %cst_46 {dimension_numbers = #tpu.dot_dimension_numbers<[1], [0], [0], [1], [0, 0, 1, 1], [], []>} : vector<1x64xf32>, vector<64x64xf32>, vector<1x64xf32> -> vector<1x64xf32>
      %89 = arith.addf %88, %3 : vector<1x64xf32>
      %cst_47 = arith.constant 2.000000e+00 : f32
      %90 = vector.broadcast %cst_47 : f32 to vector<1x64xf32>
      %91 = arith.mulf %90, %79 : vector<1x64xf32>
      %92 = arith.addf %74, %91 : vector<1x64xf32>
      %cst_48 = arith.constant 2.000000e+00 : f32
      %93 = vector.broadcast %cst_48 : f32 to vector<1x64xf32>
      %94 = arith.mulf %93, %84 : vector<1x64xf32>
      %95 = arith.addf %92, %94 : vector<1x64xf32>
      %96 = arith.addf %95, %89 : vector<1x64xf32>
      %cst_49 = arith.constant 0.00297619053 : f32
      %97 = vector.broadcast %cst_49 : f32 to vector<1x64xf32>
      %98 = arith.mulf %97, %96 : vector<1x64xf32>
      %99 = arith.addf %72, %98 : vector<1x64xf32>
      %cst_50 = arith.constant dense<0.000000e+00> : vector<1x64xf32>
      %100 = tpu.matmul %99, %1, %cst_50 {dimension_numbers = #tpu.dot_dimension_numbers<[1], [0], [0], [1], [0, 0, 1, 1], [], []>} : vector<1x64xf32>, vector<64x64xf32>, vector<1x64xf32> -> vector<1x64xf32>
      %101 = arith.addf %100, %3 : vector<1x64xf32>
      %cst_51 = arith.constant 0.00892857183 : f32
      %102 = vector.broadcast %cst_51 : f32 to vector<1x64xf32>
      %103 = arith.mulf %102, %101 : vector<1x64xf32>
      %104 = arith.addf %99, %103 : vector<1x64xf32>
      %cst_52 = arith.constant dense<0.000000e+00> : vector<1x64xf32>
      %105 = tpu.matmul %104, %1, %cst_52 {dimension_numbers = #tpu.dot_dimension_numbers<[1], [0], [0], [1], [0, 0, 1, 1], [], []>} : vector<1x64xf32>, vector<64x64xf32>, vector<1x64xf32> -> vector<1x64xf32>
      %106 = arith.addf %105, %3 : vector<1x64xf32>
      %cst_53 = arith.constant 0.00892857183 : f32
      %107 = vector.broadcast %cst_53 : f32 to vector<1x64xf32>
      %108 = arith.mulf %107, %106 : vector<1x64xf32>
      %109 = arith.addf %99, %108 : vector<1x64xf32>
      %cst_54 = arith.constant dense<0.000000e+00> : vector<1x64xf32>
      %110 = tpu.matmul %109, %1, %cst_54 {dimension_numbers = #tpu.dot_dimension_numbers<[1], [0], [0], [1], [0, 0, 1, 1], [], []>} : vector<1x64xf32>, vector<64x64xf32>, vector<1x64xf32> -> vector<1x64xf32>
      %111 = arith.addf %110, %3 : vector<1x64xf32>
      %cst_55 = arith.constant 0.0178571437 : f32
      %112 = vector.broadcast %cst_55 : f32 to vector<1x64xf32>
      %113 = arith.mulf %112, %111 : vector<1x64xf32>
      %114 = arith.addf %99, %113 : vector<1x64xf32>
      %cst_56 = arith.constant dense<0.000000e+00> : vector<1x64xf32>
      %115 = tpu.matmul %114, %1, %cst_56 {dimension_numbers = #tpu.dot_dimension_numbers<[1], [0], [0], [1], [0, 0, 1, 1], [], []>} : vector<1x64xf32>, vector<64x64xf32>, vector<1x64xf32> -> vector<1x64xf32>
      %116 = arith.addf %115, %3 : vector<1x64xf32>
      %cst_57 = arith.constant 2.000000e+00 : f32
      %117 = vector.broadcast %cst_57 : f32 to vector<1x64xf32>
      %118 = arith.mulf %117, %106 : vector<1x64xf32>
      %119 = arith.addf %101, %118 : vector<1x64xf32>
      %cst_58 = arith.constant 2.000000e+00 : f32
      %120 = vector.broadcast %cst_58 : f32 to vector<1x64xf32>
      %121 = arith.mulf %120, %111 : vector<1x64xf32>
      %122 = arith.addf %119, %121 : vector<1x64xf32>
      %123 = arith.addf %122, %116 : vector<1x64xf32>
      %cst_59 = arith.constant 0.00297619053 : f32
      %124 = vector.broadcast %cst_59 : f32 to vector<1x64xf32>
      %125 = arith.mulf %124, %123 : vector<1x64xf32>
      %126 = arith.addf %99, %125 : vector<1x64xf32>
      %cst_60 = arith.constant dense<0.000000e+00> : vector<1x64xf32>
      %127 = tpu.matmul %126, %1, %cst_60 {dimension_numbers = #tpu.dot_dimension_numbers<[1], [0], [0], [1], [0, 0, 1, 1], [], []>} : vector<1x64xf32>, vector<64x64xf32>, vector<1x64xf32> -> vector<1x64xf32>
      %128 = arith.addf %127, %3 : vector<1x64xf32>
      %cst_61 = arith.constant 0.00892857183 : f32
      %129 = vector.broadcast %cst_61 : f32 to vector<1x64xf32>
      %130 = arith.mulf %129, %128 : vector<1x64xf32>
      %131 = arith.addf %126, %130 : vector<1x64xf32>
      %cst_62 = arith.constant dense<0.000000e+00> : vector<1x64xf32>
      %132 = tpu.matmul %131, %1, %cst_62 {dimension_numbers = #tpu.dot_dimension_numbers<[1], [0], [0], [1], [0, 0, 1, 1], [], []>} : vector<1x64xf32>, vector<64x64xf32>, vector<1x64xf32> -> vector<1x64xf32>
      %133 = arith.addf %132, %3 : vector<1x64xf32>
      %cst_63 = arith.constant 0.00892857183 : f32
      %134 = vector.broadcast %cst_63 : f32 to vector<1x64xf32>
      %135 = arith.mulf %134, %133 : vector<1x64xf32>
      %136 = arith.addf %126, %135 : vector<1x64xf32>
      %cst_64 = arith.constant dense<0.000000e+00> : vector<1x64xf32>
      %137 = tpu.matmul %136, %1, %cst_64 {dimension_numbers = #tpu.dot_dimension_numbers<[1], [0], [0], [1], [0, 0, 1, 1], [], []>} : vector<1x64xf32>, vector<64x64xf32>, vector<1x64xf32> -> vector<1x64xf32>
      %138 = arith.addf %137, %3 : vector<1x64xf32>
      %cst_65 = arith.constant 0.0178571437 : f32
      %139 = vector.broadcast %cst_65 : f32 to vector<1x64xf32>
      %140 = arith.mulf %139, %138 : vector<1x64xf32>
      %141 = arith.addf %126, %140 : vector<1x64xf32>
      %cst_66 = arith.constant dense<0.000000e+00> : vector<1x64xf32>
      %142 = tpu.matmul %141, %1, %cst_66 {dimension_numbers = #tpu.dot_dimension_numbers<[1], [0], [0], [1], [0, 0, 1, 1], [], []>} : vector<1x64xf32>, vector<64x64xf32>, vector<1x64xf32> -> vector<1x64xf32>
      %143 = arith.addf %142, %3 : vector<1x64xf32>
      %cst_67 = arith.constant 2.000000e+00 : f32
      %144 = vector.broadcast %cst_67 : f32 to vector<1x64xf32>
      %145 = arith.mulf %144, %133 : vector<1x64xf32>
      %146 = arith.addf %128, %145 : vector<1x64xf32>
      %cst_68 = arith.constant 2.000000e+00 : f32
      %147 = vector.broadcast %cst_68 : f32 to vector<1x64xf32>
      %148 = arith.mulf %147, %138 : vector<1x64xf32>
      %149 = arith.addf %146, %148 : vector<1x64xf32>
      %150 = arith.addf %149, %143 : vector<1x64xf32>
      %cst_69 = arith.constant 0.00297619053 : f32
      %151 = vector.broadcast %cst_69 : f32 to vector<1x64xf32>
      %152 = arith.mulf %151, %150 : vector<1x64xf32>
      %153 = arith.addf %126, %152 : vector<1x64xf32>
      %cst_70 = arith.constant dense<0.000000e+00> : vector<1x64xf32>
      %154 = tpu.matmul %153, %1, %cst_70 {dimension_numbers = #tpu.dot_dimension_numbers<[1], [0], [0], [1], [0, 0, 1, 1], [], []>} : vector<1x64xf32>, vector<64x64xf32>, vector<1x64xf32> -> vector<1x64xf32>
      %155 = arith.addf %154, %3 : vector<1x64xf32>
      %cst_71 = arith.constant 0.00892857183 : f32
      %156 = vector.broadcast %cst_71 : f32 to vector<1x64xf32>
      %157 = arith.mulf %156, %155 : vector<1x64xf32>
      %158 = arith.addf %153, %157 : vector<1x64xf32>
      %cst_72 = arith.constant dense<0.000000e+00> : vector<1x64xf32>
      %159 = tpu.matmul %158, %1, %cst_72 {dimension_numbers = #tpu.dot_dimension_numbers<[1], [0], [0], [1], [0, 0, 1, 1], [], []>} : vector<1x64xf32>, vector<64x64xf32>, vector<1x64xf32> -> vector<1x64xf32>
      %160 = arith.addf %159, %3 : vector<1x64xf32>
      %cst_73 = arith.constant 0.00892857183 : f32
      %161 = vector.broadcast %cst_73 : f32 to vector<1x64xf32>
      %162 = arith.mulf %161, %160 : vector<1x64xf32>
      %163 = arith.addf %153, %162 : vector<1x64xf32>
      %cst_74 = arith.constant dense<0.000000e+00> : vector<1x64xf32>
      %164 = tpu.matmul %163, %1, %cst_74 {dimension_numbers = #tpu.dot_dimension_numbers<[1], [0], [0], [1], [0, 0, 1, 1], [], []>} : vector<1x64xf32>, vector<64x64xf32>, vector<1x64xf32> -> vector<1x64xf32>
      %165 = arith.addf %164, %3 : vector<1x64xf32>
      %cst_75 = arith.constant 0.0178571437 : f32
      %166 = vector.broadcast %cst_75 : f32 to vector<1x64xf32>
      %167 = arith.mulf %166, %165 : vector<1x64xf32>
      %168 = arith.addf %153, %167 : vector<1x64xf32>
      %cst_76 = arith.constant dense<0.000000e+00> : vector<1x64xf32>
      %169 = tpu.matmul %168, %1, %cst_76 {dimension_numbers = #tpu.dot_dimension_numbers<[1], [0], [0], [1], [0, 0, 1, 1], [], []>} : vector<1x64xf32>, vector<64x64xf32>, vector<1x64xf32> -> vector<1x64xf32>
      %170 = arith.addf %169, %3 : vector<1x64xf32>
      %cst_77 = arith.constant 2.000000e+00 : f32
      %171 = vector.broadcast %cst_77 : f32 to vector<1x64xf32>
      %172 = arith.mulf %171, %160 : vector<1x64xf32>
      %173 = arith.addf %155, %172 : vector<1x64xf32>
      %cst_78 = arith.constant 2.000000e+00 : f32
      %174 = vector.broadcast %cst_78 : f32 to vector<1x64xf32>
      %175 = arith.mulf %174, %165 : vector<1x64xf32>
      %176 = arith.addf %173, %175 : vector<1x64xf32>
      %177 = arith.addf %176, %170 : vector<1x64xf32>
      %cst_79 = arith.constant 0.00297619053 : f32
      %178 = vector.broadcast %cst_79 : f32 to vector<1x64xf32>
      %179 = arith.mulf %178, %177 : vector<1x64xf32>
      %180 = arith.addf %153, %179 : vector<1x64xf32>
      %cst_80 = arith.constant dense<0.000000e+00> : vector<1x64xf32>
      %181 = tpu.matmul %180, %1, %cst_80 {dimension_numbers = #tpu.dot_dimension_numbers<[1], [0], [0], [1], [0, 0, 1, 1], [], []>} : vector<1x64xf32>, vector<64x64xf32>, vector<1x64xf32> -> vector<1x64xf32>
      %182 = arith.addf %181, %3 : vector<1x64xf32>
      %cst_81 = arith.constant 0.00892857183 : f32
      %183 = vector.broadcast %cst_81 : f32 to vector<1x64xf32>
      %184 = arith.mulf %183, %182 : vector<1x64xf32>
      %185 = arith.addf %180, %184 : vector<1x64xf32>
      %cst_82 = arith.constant dense<0.000000e+00> : vector<1x64xf32>
      %186 = tpu.matmul %185, %1, %cst_82 {dimension_numbers = #tpu.dot_dimension_numbers<[1], [0], [0], [1], [0, 0, 1, 1], [], []>} : vector<1x64xf32>, vector<64x64xf32>, vector<1x64xf32> -> vector<1x64xf32>
      %187 = arith.addf %186, %3 : vector<1x64xf32>
      %cst_83 = arith.constant 0.00892857183 : f32
      %188 = vector.broadcast %cst_83 : f32 to vector<1x64xf32>
      %189 = arith.mulf %188, %187 : vector<1x64xf32>
      %190 = arith.addf %180, %189 : vector<1x64xf32>
      %cst_84 = arith.constant dense<0.000000e+00> : vector<1x64xf32>
      %191 = tpu.matmul %190, %1, %cst_84 {dimension_numbers = #tpu.dot_dimension_numbers<[1], [0], [0], [1], [0, 0, 1, 1], [], []>} : vector<1x64xf32>, vector<64x64xf32>, vector<1x64xf32> -> vector<1x64xf32>
      %192 = arith.addf %191, %3 : vector<1x64xf32>
      %cst_85 = arith.constant 0.0178571437 : f32
      %193 = vector.broadcast %cst_85 : f32 to vector<1x64xf32>
      %194 = arith.mulf %193, %192 : vector<1x64xf32>
      %195 = arith.addf %180, %194 : vector<1x64xf32>
      %cst_86 = arith.constant dense<0.000000e+00> : vector<1x64xf32>
      %196 = tpu.matmul %195, %1, %cst_86 {dimension_numbers = #tpu.dot_dimension_numbers<[1], [0], [0], [1], [0, 0, 1, 1], [], []>} : vector<1x64xf32>, vector<64x64xf32>, vector<1x64xf32> -> vector<1x64xf32>
      %197 = arith.addf %196, %3 : vector<1x64xf32>
      %cst_87 = arith.constant 2.000000e+00 : f32
      %198 = vector.broadcast %cst_87 : f32 to vector<1x64xf32>
      %199 = arith.mulf %198, %187 : vector<1x64xf32>
      %200 = arith.addf %182, %199 : vector<1x64xf32>
      %cst_88 = arith.constant 2.000000e+00 : f32
      %201 = vector.broadcast %cst_88 : f32 to vector<1x64xf32>
      %202 = arith.mulf %201, %192 : vector<1x64xf32>
      %203 = arith.addf %200, %202 : vector<1x64xf32>
      %204 = arith.addf %203, %197 : vector<1x64xf32>
      %cst_89 = arith.constant 0.00297619053 : f32
      %205 = vector.broadcast %cst_89 : f32 to vector<1x64xf32>
      %206 = arith.mulf %205, %204 : vector<1x64xf32>
      %207 = arith.addf %180, %206 : vector<1x64xf32>
      %cst_90 = arith.constant dense<0.000000e+00> : vector<1x64xf32>
      %208 = tpu.matmul %207, %1, %cst_90 {dimension_numbers = #tpu.dot_dimension_numbers<[1], [0], [0], [1], [0, 0, 1, 1], [], []>} : vector<1x64xf32>, vector<64x64xf32>, vector<1x64xf32> -> vector<1x64xf32>
      %209 = arith.addf %208, %3 : vector<1x64xf32>
      %cst_91 = arith.constant 0.00892857183 : f32
      %210 = vector.broadcast %cst_91 : f32 to vector<1x64xf32>
      %211 = arith.mulf %210, %209 : vector<1x64xf32>
      %212 = arith.addf %207, %211 : vector<1x64xf32>
      %cst_92 = arith.constant dense<0.000000e+00> : vector<1x64xf32>
      %213 = tpu.matmul %212, %1, %cst_92 {dimension_numbers = #tpu.dot_dimension_numbers<[1], [0], [0], [1], [0, 0, 1, 1], [], []>} : vector<1x64xf32>, vector<64x64xf32>, vector<1x64xf32> -> vector<1x64xf32>
      %214 = arith.addf %213, %3 : vector<1x64xf32>
      %cst_93 = arith.constant 0.00892857183 : f32
      %215 = vector.broadcast %cst_93 : f32 to vector<1x64xf32>
      %216 = arith.mulf %215, %214 : vector<1x64xf32>
      %217 = arith.addf %207, %216 : vector<1x64xf32>
      %cst_94 = arith.constant dense<0.000000e+00> : vector<1x64xf32>
      %218 = tpu.matmul %217, %1, %cst_94 {dimension_numbers = #tpu.dot_dimension_numbers<[1], [0], [0], [1], [0, 0, 1, 1], [], []>} : vector<1x64xf32>, vector<64x64xf32>, vector<1x64xf32> -> vector<1x64xf32>
      %219 = arith.addf %218, %3 : vector<1x64xf32>
      %cst_95 = arith.constant 0.0178571437 : f32
      %220 = vector.broadcast %cst_95 : f32 to vector<1x64xf32>
      %221 = arith.mulf %220, %219 : vector<1x64xf32>
      %222 = arith.addf %207, %221 : vector<1x64xf32>
      %cst_96 = arith.constant dense<0.000000e+00> : vector<1x64xf32>
      %223 = tpu.matmul %222, %1, %cst_96 {dimension_numbers = #tpu.dot_dimension_numbers<[1], [0], [0], [1], [0, 0, 1, 1], [], []>} : vector<1x64xf32>, vector<64x64xf32>, vector<1x64xf32> -> vector<1x64xf32>
      %224 = arith.addf %223, %3 : vector<1x64xf32>
      %cst_97 = arith.constant 2.000000e+00 : f32
      %225 = vector.broadcast %cst_97 : f32 to vector<1x64xf32>
      %226 = arith.mulf %225, %214 : vector<1x64xf32>
      %227 = arith.addf %209, %226 : vector<1x64xf32>
      %cst_98 = arith.constant 2.000000e+00 : f32
      %228 = vector.broadcast %cst_98 : f32 to vector<1x64xf32>
      %229 = arith.mulf %228, %219 : vector<1x64xf32>
      %230 = arith.addf %227, %229 : vector<1x64xf32>
      %231 = arith.addf %230, %224 : vector<1x64xf32>
      %cst_99 = arith.constant 0.00297619053 : f32
      %232 = vector.broadcast %cst_99 : f32 to vector<1x64xf32>
      %233 = arith.mulf %232, %231 : vector<1x64xf32>
      %234 = arith.addf %207, %233 : vector<1x64xf32>
      %c1_i32_100 = arith.constant 1 : i32
      %235 = arith.addi %15, %c1_i32_100 : i32
      %c0_101 = arith.constant 0 : index
      %236 = arith.index_cast %235 : i32 to index
      %c0_102 = arith.constant 0 : index
      %237 = vector.load %arg6[%c0_101, %236, %c0_102] : memref<1x8x64xf32, #tpu.memory_space<vmem>>, vector<1x1x64xf32>
      %238 = vector.shape_cast %237 : vector<1x1x64xf32> to vector<1x64xf32>
      %239 = vector.shape_cast %234 : vector<1x64xf32> to vector<1x1x64xf32>
      tpu.vector_store %arg6[%c0_101, %236, %c0_102], %239 {strides = array<i32>} : memref<1x8x64xf32, #tpu.memory_space<vmem>>, vector<1x1x64xf32>,
    }
    %c7_i32_15 = arith.constant 7 : i32
    return
  }
  func.func @transform_0(%arg0: i32) -> (i32, i32, i32) {
    %c0_i32 = arith.constant 0 : i32
    %c0_i32_0 = arith.constant 0 : i32
    %c0_i32_1 = arith.constant 0 : i32
    return %arg0, %c0_i32, %c0_i32_0 : i32, i32, i32
  }
  func.func @transform_1(%arg0: i32) -> (i32, i32) {
    %c0_i32 = arith.constant 0 : i32
    %c0_i32_0 = arith.constant 0 : i32
    %c0_i32_1 = arith.constant 0 : i32
    return %c0_i32, %c0_i32_0 : i32, i32
  }
  func.func @transform_2(%arg0: i32) -> (i32, i32) {
    %c0_i32 = arith.constant 0 : i32
    %c0_i32_0 = arith.constant 0 : i32
    %c0_i32_1 = arith.constant 0 : i32
    return %c0_i32, %c0_i32_0 : i32, i32
  }
  func.func @transform_3(%arg0: i32) -> (i32, i32, i32) {
    %c0_i32 = arith.constant 0 : i32
    %c0_i32_0 = arith.constant 0 : i32
    %c0_i32_1 = arith.constant 0 : i32
    return %arg0, %c0_i32, %c0_i32_0 : i32, i32, i32
  }
  func.func @transform_4(%arg0: i32) -> (i32, i32, i32) {
    %c0_i32 = arith.constant 0 : i32
    %c0_i32_0 = arith.constant 0 : i32
    %c0_i32_1 = arith.constant 0 : i32
    return %arg0, %c0_i32, %c0_i32_0 : i32, i32, i32
  }
  func.func @transform_5(%arg0: i32) -> (i32, i32, i32) {
    %c0_i32 = arith.constant 0 : i32
    %c0_i32_0 = arith.constant 0 : i32
    %c0_i32_1 = arith.constant 0 : i32
    return %arg0, %c0_i32, %c0_i32_0 : i32, i32, i32
  }
}

</mosaic_0001>

<bundles_post_ra>
// kernel: squeeze.8
= control target key start
LH: loop header
LB: loop body
LE: loop exit
PB: predicated region body
PF: predicated region fallthrough
CT: control target
= control target key end

     0   :  { %vm7_vm0 = vcmask 31744   ;;  %vm13_vm1 = vcmask 64544   ;;  %s39_s0 = inlined_call_operand.vmem [shape: f32[2,4], index: 0, kind: input, shape index: {}]   ;;  %s40_s1 = inlined_call_operand.vmem [shape: f32[1,1,8], index: 1, kind: output, shape index: {}]  }
   0x1   :  { %v4_v0 = vld [vmem:[%s39_s0] sm:$0x3]  ;;  %s22_s0 = smov 4  }
   0x2   :  { %5 = vst [vmem:[#allocation1] sm:$0x3] %v4_v0 }
   0x9   :  { %v10_v1 = vld [vmem:[#allocation1 + $0x1] sm:$0x1]   ;;  %v6_v2 = vld [vmem:[#allocation1] sm:$0x1]  }
   0xa   :  { %11 = vrot.lane.b32.xlu0 %v10_v1, %s22_s0  ;;  %8 = vst.msk [vmem:[#allocation0] sm:$0x1] %vm7_vm0, %v6_v2  }
  0x7c   :  { %v12_v3 = vpop.permute.xlu0 %11  }
  0x7d   :  { %14 = vst.msk [vmem:[#allocation0] sm:$0x1] %vm13_vm1, %v12_v3  }
  0x84   :  { %v17_v4 = vld [vmem:[#allocation0] sm:$0x1] }
  0x85   :  { %20 = vst [vmem:[%s40_s1] sm:$0x1] %v17_v4 }

// kernel: _forward_impl.1
= control target key start
LH: loop header
LB: loop body
LE: loop exit
PB: predicated region body
PF: predicated region fallthrough
CT: control target
= control target key end

     0   :  { %vm32_vm0 = vcmask 64512   ;;  %vm56_vm1 = vcmask 516096   ;;  %s1060_s17 = smov 0   ;;  %s1404_s3 = inlined_call_operand.vmem [shape: f32[1,64,64], index: 3, kind: input, shape index: {}]   ;;  %s1405_s4 = inlined_call_operand.vmem [shape: f32[1,1,64], index: 4, kind: input, shape index: {}]   ;;  %s1406_s1 = inlined_call_operand.vmem [shape: f32[8,64], index: 1, kind: input, shape index: {}]   ;;  %s1407_s0 = inlined_call_operand.vmem [shape: f32[1,1,8], index: 0, kind: input, shape index: {}]   ;;  %s1408_s2 = inlined_call_operand.vmem [shape: f32[1,64], index: 2, kind: input, shape index: {}]   ;;  %s1409_s5 = inlined_call_operand.vmem [shape: f32[1,8,64], index: 5, kind: output, shape index: {}]  }
   0x1   :  { %v1005_v0 = vld [vmem:[%s1404_s3] sm:$0xff]  ;;  %v1010_v1 = vld [vmem:[%s1404_s3 + $0x8] sm:$0xff]  ;;  %v1015_v2 = vld [vmem:[%s1404_s3 + $0x10] sm:$0xff] }
   0x2   :  { %v1020_v3 = vld [vmem:[%s1404_s3 + $0x18] sm:$0xff]  ;;  %v1025_v4 = vld [vmem:[%s1404_s3 + $0x20] sm:$0xff]  ;;  %v1030_v5 = vld [vmem:[%s1404_s3 + $0x28] sm:$0xff] }
   0x3   :  { %v1035_v6 = vld [vmem:[%s1404_s3 + $0x30] sm:$0xff]  ;;  %v1040_v7 = vld [vmem:[%s1404_s3 + $0x38] sm:$0xff]  ;;  %v1045_v8 = vld [vmem:[%s1405_s4] sm:$0x1] }
   0x4   :  { %v30_v9 = vld [vmem:[%s1406_s1] sm:$0xff] }
   0x5   :  { %v29_v10 = vld [vmem:[%s1407_s0] sm:$0x1]  ;;  %51 = vmatpush.msra.mxu0 %v30_v9 }
   0x6   :  { %922 = vmatmul.msk.f32.vlgmr.msra.gmra.mxu0 %vm32_vm0, %v29_v10  ;;  %v31_v11 = vld [vmem:[%s1408_s2] sm:$0x1] }
  0x83   :  { %v53_v12 = vpop.f32.mrf.mxu0 }
  0x84   :  { %v54_v13 = vadd.f32 %v53_v12, %v31_v11 }
  0x86   :  { %57 = vst.msk [vmem:[%s1409_s5] sm:$0x1] %vm56_vm1, %v54_v13 }
  0x87 LB: > { %78 = vmatpush.msra.mxu0 %v1040_v7  ;;  %103 = vmatpush.msra.mxu1 %v1040_v7  ;;  %s1087_s2 = scalar_lea.vmem %s1409_s5, %s970_s17  ;;  %vm66_vm2 = vcmask 523264   ;;  %s63_s17 = sadd.s32 1, %s970_s17   ;;  %s970_s17 = sphi %s1060_s17, %s63_s17  }
  0x88   : > { %128 = vmatpush.msra.mxu2 %v1040_v7  ;;  %153 = vmatpush.msra.mxu3 %v1040_v7  ;;  %p60_p0 = scmp.ge.s32.totalorder %s63_s17, 7  }
  0x89   : > { %79 = vmatpush.msra.mxu0 %v1035_v6  ;;  %104 = vmatpush.msra.mxu1 %v1035_v6 }
  0x8a   : > { %129 = vmatpush.msra.mxu2 %v1035_v6  ;;  %154 = vmatpush.msra.mxu3 %v1035_v6 }
  0x8b   : > { %80 = vmatpush.msra.mxu0 %v1030_v5  ;;  %105 = vmatpush.msra.mxu1 %v1030_v5 }
  0x8c   : > { %130 = vmatpush.msra.mxu2 %v1030_v5  ;;  %155 = vmatpush.msra.mxu3 %v1030_v5 }
  0x8d   : > { %81 = vmatpush.msra.mxu0 %v1025_v4  ;;  %106 = vmatpush.msra.mxu1 %v1025_v4  ;;  %v1097_v14 = vld [vmem:[%s1087_s2] sm:$0x1] }
  0x8e   : > { %131 = vmatpush.msra.mxu2 %v1025_v4  ;;  %156 = vmatpush.msra.mxu3 %v1025_v4 }
  0x8f   : > { %82 = vmatpush.msra.mxu0 %v1020_v3  ;;  %107 = vmatpush.msra.mxu1 %v1020_v3 }
  0x90   : > { %132 = vmatpush.msra.mxu2 %v1020_v3  ;;  %157 = vmatpush.msra.mxu3 %v1020_v3 }
  0x91   : > { %83 = vmatpush.msra.mxu0 %v1015_v2  ;;  %108 = vmatpush.msra.mxu1 %v1015_v2 }
  0x92   : > { %133 = vmatpush.msra.mxu2 %v1015_v2  ;;  %158 = vmatpush.msra.mxu3 %v1015_v2 }
  0x93   : > { %84 = vmatpush.msra.mxu0 %v1010_v1  ;;  %109 = vmatpush.msra.mxu1 %v1010_v1 }
  0x94   : > { %134 = vmatpush.msra.mxu2 %v1010_v1  ;;  %159 = vmatpush.msra.mxu3 %v1010_v1 }
  0x95   : > { %85 = vmatpush.msra.mxu0 %v1005_v0  ;;  %110 = vmatpush.msra.mxu1 %v1005_v0 }
  0x96   : > { %923 = vmatmul.msk.f32.vlgmr.msra.gmra.mxu0 %vm66_vm2, %v1097_v14  ;;  %135 = vmatpush.msra.mxu2 %v1005_v0 }
  0x97   : > { %160 = vmatpush.msra.mxu3 %v1005_v0  ;;  %183 = vmatpush.msrb.mxu0 %v1040_v7 }
  0x98   : > { %208 = vmatpush.msrb.mxu1 %v1040_v7  ;;  %233 = vmatpush.msrb.mxu2 %v1040_v7 }
  0x99   : > { %184 = vmatpush.msrb.mxu0 %v1035_v6  ;;  %258 = vmatpush.msrb.mxu3 %v1040_v7 }
  0x9a   : > { %209 = vmatpush.msrb.mxu1 %v1035_v6  ;;  %234 = vmatpush.msrb.mxu2 %v1035_v6 }
  0x9b   : > { %185 = vmatpush.msrb.mxu0 %v1030_v5  ;;  %259 = vmatpush.msrb.mxu3 %v1035_v6 }
  0x9c   : > { %210 = vmatpush.msrb.mxu1 %v1030_v5  ;;  %235 = vmatpush.msrb.mxu2 %v1030_v5 }
  0x9d   : > { %186 = vmatpush.msrb.mxu0 %v1025_v4  ;;  %260 = vmatpush.msrb.mxu3 %v1030_v5 }
  0x9e   : > { %211 = vmatpush.msrb.mxu1 %v1025_v4  ;;  %236 = vmatpush.msrb.mxu2 %v1025_v4 }
  0x9f   : > { %187 = vmatpush.msrb.mxu0 %v1020_v3  ;;  %261 = vmatpush.msrb.mxu3 %v1025_v4 }
  0xa0   : > { %212 = vmatpush.msrb.mxu1 %v1020_v3  ;;  %237 = vmatpush.msrb.mxu2 %v1020_v3 }
  0xa1   : > { %188 = vmatpush.msrb.mxu0 %v1015_v2  ;;  %262 = vmatpush.msrb.mxu3 %v1020_v3 }
  0xa2   : > { %213 = vmatpush.msrb.mxu1 %v1015_v2  ;;  %238 = vmatpush.msrb.mxu2 %v1015_v2 }
  0xa3   : > { %189 = vmatpush.msrb.mxu0 %v1010_v1  ;;  %263 = vmatpush.msrb.mxu3 %v1015_v2 }
  0xa4   : > { %214 = vmatpush.msrb.mxu1 %v1010_v1  ;;  %239 = vmatpush.msrb.mxu2 %v1010_v1 }
  0xa5   : > { %190 = vmatpush.msrb.mxu0 %v1005_v0  ;;  %264 = vmatpush.msrb.mxu3 %v1010_v1 }
  0xa6   : > { %215 = vmatpush.msrb.mxu1 %v1005_v0  ;;  %240 = vmatpush.msrb.mxu2 %v1005_v0 }
  0xa7   : > { %265 = vmatpush.msrb.mxu3 %v1005_v0  ;;  %288 = vmatpush.msra.mxu0 %v1040_v7 }
  0xa9   : > { %289 = vmatpush.msra.mxu0 %v1035_v6 }
  0xab   : > { %290 = vmatpush.msra.mxu0 %v1030_v5 }
  0xad   : > { %291 = vmatpush.msra.mxu0 %v1025_v4 }
  0xaf   : > { %292 = vmatpush.msra.mxu0 %v1020_v3 }
  0xb1   : > { %293 = vmatpush.msra.mxu0 %v1015_v2 }
  0xb3   : > { %294 = vmatpush.msra.mxu0 %v1010_v1 }
  0xb5   : > { %295 = vmatpush.msra.mxu0 %v1005_v0 }
 0x113   : > { %v87_v15 = vpop.f32.mrf.mxu0 }
 0x114   : > { %v88_v16 = vadd.f32 %v87_v15, %v1045_v8 }
 0x116   : > { %v90_v17 = vmul.f32 0.008928572, %v88_v16 }
 0x118   : > { %v91_v18 = vadd.f32 %v90_v17, %v1097_v14 }
 0x11a   : > { %924 = vmatmul.msk.f32.vlgmr.msra.gmra.mxu1 %vm66_vm2, %v91_v18 }
 0x11b   : > { %313 = vmatpush.msra.mxu1 %v1040_v7 }
 0x11d   : > { %314 = vmatpush.msra.mxu1 %v1035_v6 }
 0x11f   : > { %315 = vmatpush.msra.mxu1 %v1030_v5 }
 0x121   : > { %316 = vmatpush.msra.mxu1 %v1025_v4 }
 0x123   : > { %317 = vmatpush.msra.mxu1 %v1020_v3 }
 0x125   : > { %318 = vmatpush.msra.mxu1 %v1015_v2 }
 0x127   : > { %319 = vmatpush.msra.mxu1 %v1010_v1 }
 0x129   : > { %320 = vmatpush.msra.mxu1 %v1005_v0 }
 0x197   : > { %v112_v19 = vpop.f32.mrf.mxu1 }
 0x198   : > { %v113_v20 = vadd.f32 %v112_v19, %v1045_v8 }
 0x19a   : > { %v115_v21 = vmul.f32 0.008928572, %v113_v20  ;;  %v165_v23 = vmul.f32 2.0, %v113_v20 }
 0x19c   : > { %v116_v22 = vadd.f32 %v115_v21, %v1097_v14  ;;  %v166_v26 = vadd.f32 %v165_v23, %v88_v16 }
 0x19e   : > { %925 = vmatmul.msk.f32.vlgmr.msra.gmra.mxu2 %vm66_vm2, %v116_v22 }
 0x19f   : > { %338 = vmatpush.msra.mxu2 %v1040_v7 }
 0x1a1   : > { %339 = vmatpush.msra.mxu2 %v1035_v6 }
 0x1a3   : > { %340 = vmatpush.msra.mxu2 %v1030_v5 }
 0x1a5   : > { %341 = vmatpush.msra.mxu2 %v1025_v4 }
 0x1a7   : > { %342 = vmatpush.msra.mxu2 %v1020_v3 }
 0x1a9   : > { %343 = vmatpush.msra.mxu2 %v1015_v2 }
 0x1ab   : > { %344 = vmatpush.msra.mxu2 %v1010_v1 }
 0x1ad   : > { %345 = vmatpush.msra.mxu2 %v1005_v0 }
 0x221   : > { %v137_v24 = vpop.f32.mrf.mxu2 }
 0x222   : > { %v138_v25 = vadd.f32 %v137_v24, %v1045_v8 }
 0x224   : > { %v140_v27 = vmul.f32 0.017857144, %v138_v25  ;;  %v167_v28 = vmul.f32 2.0, %v138_v25 }
 0x226   : > { %v141_v29 = vadd.f32 %v140_v27, %v1097_v14  ;;  %v168_v30 = vadd.f32 %v167_v28, %v166_v26 }
 0x228   : > { %926 = vmatmul.msk.f32.vlgmr.msra.gmra.mxu3 %vm66_vm2, %v141_v29 }
 0x229   : > { %363 = vmatpush.msra.mxu3 %v1040_v7 }
 0x22b   : > { %364 = vmatpush.msra.mxu3 %v1035_v6 }
 0x22d   : > { %365 = vmatpush.msra.mxu3 %v1030_v5 }
 0x22f   : > { %366 = vmatpush.msra.mxu3 %v1025_v4 }
 0x231   : > { %367 = vmatpush.msra.mxu3 %v1020_v3 }
 0x233   : > { %368 = vmatpush.msra.mxu3 %v1015_v2 }
 0x235   : > { %369 = vmatpush.msra.mxu3 %v1010_v1 }
 0x237   : > { %370 = vmatpush.msra.mxu3 %v1005_v0 }
 0x2ab   : > { %v162_v31 = vpop.f32.mrf.mxu3 }
 0x2ac   : > { %v163_v32 = vadd.f32 %v162_v31, %v1045_v8 }
 0x2ae   : > { %v169_v33 = vadd.f32 %v168_v30, %v163_v32 }
 0x2b0   : > { %v170_v34 = vmul.f32 0.0029761905, %v169_v33 }
 0x2b2   : > { %v171_v35 = vadd.f32 %v170_v34, %v1097_v14 }
 0x2b4   : > { %927 = vmatmul.msk.f32.vlgmr.msrb.gmra.mxu0 %vm66_vm2, %v171_v35 }
 0x2b5   : > { %393 = vmatpush.msrb.mxu0 %v1040_v7 }
 0x2b7   : > { %394 = vmatpush.msrb.mxu0 %v1035_v6 }
 0x2b9   : > { %395 = vmatpush.msrb.mxu0 %v1030_v5 }
 0x2bb   : > { %396 = vmatpush.msrb.mxu0 %v1025_v4 }
 0x2bd   : > { %397 = vmatpush.msrb.mxu0 %v1020_v3 }
 0x2bf   : > { %398 = vmatpush.msrb.mxu0 %v1015_v2 }
 0x2c1   : > { %399 = vmatpush.msrb.mxu0 %v1010_v1 }
 0x2c3   : > { %400 = vmatpush.msrb.mxu0 %v1005_v0 }
 0x331   : > { %v192_v36 = vpop.f32.mrf.mxu0 }
 0x332   : > { %v193_v37 = vadd.f32 %v192_v36, %v1045_v8 }
 0x334   : > { %v195_v38 = vmul.f32 0.008928572, %v193_v37 }
 0x336   : > { %v196_v39 = vadd.f32 %v195_v38, %v171_v35 }
 0x338   : > { %928 = vmatmul.msk.f32.vlgmr.msrb.gmra.mxu1 %vm66_vm2, %v196_v39 }
 0x339   : > { %418 = vmatpush.msrb.mxu1 %v1040_v7 }
 0x33b   : > { %419 = vmatpush.msrb.mxu1 %v1035_v6 }
 0x33d   : > { %420 = vmatpush.msrb.mxu1 %v1030_v5 }
 0x33f   : > { %421 = vmatpush.msrb.mxu1 %v1025_v4 }
 0x341   : > { %422 = vmatpush.msrb.mxu1 %v1020_v3 }
 0x343   : > { %423 = vmatpush.msrb.mxu1 %v1015_v2 }
 0x345   : > { %424 = vmatpush.msrb.mxu1 %v1010_v1 }
 0x347   : > { %425 = vmatpush.msrb.mxu1 %v1005_v0 }
 0x3b5   : > { %v217_v40 = vpop.f32.mrf.mxu1 }
 0x3b6   : > { %v218_v41 = vadd.f32 %v217_v40, %v1045_v8 }
 0x3b8   : > { %v220_v42 = vmul.f32 0.008928572, %v218_v41  ;;  %v270_v44 = vmul.f32 2.0, %v218_v41 }
 0x3ba   : > { %v221_v43 = vadd.f32 %v220_v42, %v171_v35  ;;  %v271_v47 = vadd.f32 %v270_v44, %v193_v37 }
 0x3bc   : > { %929 = vmatmul.msk.f32.vlgmr.msrb.gmra.mxu2 %vm66_vm2, %v221_v43 }
 0x3bd   : > { %443 = vmatpush.msrb.mxu2 %v1040_v7 }
 0x3bf   : > { %444 = vmatpush.msrb.mxu2 %v1035_v6 }
 0x3c1   : > { %445 = vmatpush.msrb.mxu2 %v1030_v5 }
 0x3c3   : > { %446 = vmatpush.msrb.mxu2 %v1025_v4 }
 0x3c5   : > { %447 = vmatpush.msrb.mxu2 %v1020_v3 }
 0x3c7   : > { %448 = vmatpush.msrb.mxu2 %v1015_v2 }
 0x3c9   : > { %449 = vmatpush.msrb.mxu2 %v1010_v1 }
 0x3cb   : > { %450 = vmatpush.msrb.mxu2 %v1005_v0 }
 0x43f   : > { %v242_v45 = vpop.f32.mrf.mxu2 }
 0x440   : > { %v243_v46 = vadd.f32 %v242_v45, %v1045_v8 }
 0x442   : > { %v245_v48 = vmul.f32 0.017857144, %v243_v46  ;;  %v272_v49 = vmul.f32 2.0, %v243_v46 }
 0x444   : > { %v246_v50 = vadd.f32 %v245_v48, %v171_v35  ;;  %v273_v51 = vadd.f32 %v272_v49, %v271_v47 }
 0x446   : > { %930 = vmatmul.msk.f32.vlgmr.msrb.gmra.mxu3 %vm66_vm2, %v246_v50 }
 0x447   : > { %468 = vmatpush.msrb.mxu3 %v1040_v7 }
 0x449   : > { %469 = vmatpush.msrb.mxu3 %v1035_v6 }
 0x44b   : > { %470 = vmatpush.msrb.mxu3 %v1030_v5 }
 0x44d   : > { %471 = vmatpush.msrb.mxu3 %v1025_v4 }
 0x44f   : > { %472 = vmatpush.msrb.mxu3 %v1020_v3 }
 0x451   : > { %473 = vmatpush.msrb.mxu3 %v1015_v2 }
 0x453   : > { %474 = vmatpush.msrb.mxu3 %v1010_v1 }
 0x455   : > { %475 = vmatpush.msrb.mxu3 %v1005_v0 }
 0x4c9   : > { %v267_v52 = vpop.f32.mrf.mxu3 }
 0x4ca   : > { %v268_v53 = vadd.f32 %v267_v52, %v1045_v8 }
 0x4cc   : > { %v274_v54 = vadd.f32 %v273_v51, %v268_v53 }
 0x4ce   : > { %v275_v55 = vmul.f32 0.0029761905, %v274_v54 }
 0x4d0   : > { %v276_v56 = vadd.f32 %v275_v55, %v171_v35 }
 0x4d2   : > { %931 = vmatmul.msk.f32.vlgmr.msra.gmra.mxu0 %vm66_vm2, %v276_v56 }
 0x4d3   : > { %498 = vmatpush.msra.mxu0 %v1040_v7 }
 0x4d5   : > { %499 = vmatpush.msra.mxu0 %v1035_v6 }
 0x4d7   : > { %500 = vmatpush.msra.mxu0 %v1030_v5 }
 0x4d9   : > { %501 = vmatpush.msra.mxu0 %v1025_v4 }
 0x4db   : > { %502 = vmatpush.msra.mxu0 %v1020_v3 }
 0x4dd   : > { %503 = vmatpush.msra.mxu0 %v1015_v2 }
 0x4df   : > { %504 = vmatpush.msra.mxu0 %v1010_v1 }
 0x4e1   : > { %505 = vmatpush.msra.mxu0 %v1005_v0 }
 0x54f   : > { %v297_v57 = vpop.f32.mrf.mxu0 }
 0x550   : > { %v298_v58 = vadd.f32 %v297_v57, %v1045_v8 }
 0x552   : > { %v300_v59 = vmul.f32 0.008928572, %v298_v58 }
 0x554   : > { %v301_v60 = vadd.f32 %v300_v59, %v276_v56 }
 0x556   : > { %932 = vmatmul.msk.f32.vlgmr.msra.gmra.mxu1 %vm66_vm2, %v301_v60 }
 0x557   : > { %523 = vmatpush.msra.mxu1 %v1040_v7 }
 0x559   : > { %524 = vmatpush.msra.mxu1 %v1035_v6 }
 0x55b   : > { %525 = vmatpush.msra.mxu1 %v1030_v5 }
 0x55d   : > { %526 = vmatpush.msra.mxu1 %v1025_v4 }
 0x55f   : > { %527 = vmatpush.msra.mxu1 %v1020_v3 }
 0x561   : > { %528 = vmatpush.msra.mxu1 %v1015_v2 }
 0x563   : > { %529 = vmatpush.msra.mxu1 %v1010_v1 }
 0x565   : > { %530 = vmatpush.msra.mxu1 %v1005_v0 }
 0x5d3   : > { %v322_v61 = vpop.f32.mrf.mxu1 }
 0x5d4   : > { %v323_v62 = vadd.f32 %v322_v61, %v1045_v8 }
 0x5d6   : > { %v325_v63 = vmul.f32 0.008928572, %v323_v62  ;;  %v375_v10 = vmul.f32 2.0, %v323_v62 }
 0x5d8   : > { %v326_v9 = vadd.f32 %v325_v63, %v276_v56  ;;  %v376_v13 = vadd.f32 %v375_v10, %v298_v58 }
 0x5da   : > { %933 = vmatmul.msk.f32.vlgmr.msra.gmra.mxu2 %vm66_vm2, %v326_v9 }
 0x5db   : > { %548 = vmatpush.msra.mxu2 %v1040_v7 }
 0x5dd   : > { %549 = vmatpush.msra.mxu2 %v1035_v6 }
 0x5df   : > { %550 = vmatpush.msra.mxu2 %v1030_v5 }
 0x5e1   : > { %551 = vmatpush.msra.mxu2 %v1025_v4 }
 0x5e3   : > { %552 = vmatpush.msra.mxu2 %v1020_v3 }
 0x5e5   : > { %553 = vmatpush.msra.mxu2 %v1015_v2 }
 0x5e7   : > { %554 = vmatpush.msra.mxu2 %v1010_v1 }
 0x5e9   : > { %555 = vmatpush.msra.mxu2 %v1005_v0 }
 0x65d   : > { %v347_v11 = vpop.f32.mrf.mxu2 }
 0x65e   : > { %v348_v12 = vadd.f32 %v347_v11, %v1045_v8 }
 0x660   : > { %v350_v14 = vmul.f32 0.017857144, %v348_v12  ;;  %v377_v15 = vmul.f32 2.0, %v348_v12 }
 0x662   : > { %v351_v16 = vadd.f32 %v350_v14, %v276_v56  ;;  %v378_v17 = vadd.f32 %v377_v15, %v376_v13 }
 0x664   : > { %934 = vmatmul.msk.f32.vlgmr.msra.gmra.mxu3 %vm66_vm2, %v351_v16 }
 0x665   : > { %573 = vmatpush.msra.mxu3 %v1040_v7 }
 0x667   : > { %574 = vmatpush.msra.mxu3 %v1035_v6 }
 0x669   : > { %575 = vmatpush.msra.mxu3 %v1030_v5 }
 0x66b   : > { %576 = vmatpush.msra.mxu3 %v1025_v4 }
 0x66d   : > { %577 = vmatpush.msra.mxu3 %v1020_v3 }
 0x66f   : > { %578 = vmatpush.msra.mxu3 %v1015_v2 }
 0x671   : > { %579 = vmatpush.msra.mxu3 %v1010_v1 }
 0x673   : > { %580 = vmatpush.msra.mxu3 %v1005_v0 }
 0x6e7   : > { %v372_v18 = vpop.f32.mrf.mxu3 }
 0x6e8   : > { %v373_v19 = vadd.f32 %v372_v18, %v1045_v8 }
 0x6ea   : > { %v379_v20 = vadd.f32 %v378_v17, %v373_v19 }
 0x6ec   : > { %v380_v21 = vmul.f32 0.0029761905, %v379_v20 }
 0x6ee   : > { %v381_v22 = vadd.f32 %v380_v21, %v276_v56 }
 0x6f0   : > { %935 = vmatmul.msk.f32.vlgmr.msrb.gmra.mxu0 %vm66_vm2, %v381_v22 }
 0x6f1   : > { %603 = vmatpush.msrb.mxu0 %v1040_v7 }
 0x6f3   : > { %604 = vmatpush.msrb.mxu0 %v1035_v6 }
 0x6f5   : > { %605 = vmatpush.msrb.mxu0 %v1030_v5 }
 0x6f7   : > { %606 = vmatpush.msrb.mxu0 %v1025_v4 }
 0x6f9   : > { %607 = vmatpush.msrb.mxu0 %v1020_v3 }
 0x6fb   : > { %608 = vmatpush.msrb.mxu0 %v1015_v2 }
 0x6fd   : > { %609 = vmatpush.msrb.mxu0 %v1010_v1 }
 0x6ff   : > { %610 = vmatpush.msrb.mxu0 %v1005_v0 }
 0x76d   : > { %v402_v23 = vpop.f32.mrf.mxu0 }
 0x76e   : > { %v403_v24 = vadd.f32 %v402_v23, %v1045_v8 }
 0x770   : > { %v405_v25 = vmul.f32 0.008928572, %v403_v24 }
 0x772   : > { %v406_v26 = vadd.f32 %v405_v25, %v381_v22 }
 0x774   : > { %936 = vmatmul.msk.f32.vlgmr.msrb.gmra.mxu1 %vm66_vm2, %v406_v26 }
 0x775   : > { %628 = vmatpush.msrb.mxu1 %v1040_v7 }
 0x777   : > { %629 = vmatpush.msrb.mxu1 %v1035_v6 }
 0x779   : > { %630 = vmatpush.msrb.mxu1 %v1030_v5 }
 0x77b   : > { %631 = vmatpush.msrb.mxu1 %v1025_v4 }
 0x77d   : > { %632 = vmatpush.msrb.mxu1 %v1020_v3 }
 0x77f   : > { %633 = vmatpush.msrb.mxu1 %v1015_v2 }
 0x781   : > { %634 = vmatpush.msrb.mxu1 %v1010_v1 }
 0x783   : > { %635 = vmatpush.msrb.mxu1 %v1005_v0 }
 0x7f1   : > { %v427_v27 = vpop.f32.mrf.mxu1 }
 0x7f2   : > { %v428_v28 = vadd.f32 %v427_v27, %v1045_v8 }
 0x7f4   : > { %v430_v29 = vmul.f32 0.008928572, %v428_v28  ;;  %v480_v31 = vmul.f32 2.0, %v428_v28 }
 0x7f6   : > { %v431_v30 = vadd.f32 %v430_v29, %v381_v22  ;;  %v481_v34 = vadd.f32 %v480_v31, %v403_v24 }
 0x7f8   : > { %937 = vmatmul.msk.f32.vlgmr.msrb.gmra.mxu2 %vm66_vm2, %v431_v30 }
 0x7f9   : > { %653 = vmatpush.msrb.mxu2 %v1040_v7 }
 0x7fb   : > { %654 = vmatpush.msrb.mxu2 %v1035_v6 }
 0x7fd   : > { %655 = vmatpush.msrb.mxu2 %v1030_v5 }
 0x7ff   : > { %656 = vmatpush.msrb.mxu2 %v1025_v4 }
 0x801   : > { %657 = vmatpush.msrb.mxu2 %v1020_v3 }
 0x803   : > { %658 = vmatpush.msrb.mxu2 %v1015_v2 }
 0x805   : > { %659 = vmatpush.msrb.mxu2 %v1010_v1 }
 0x807   : > { %660 = vmatpush.msrb.mxu2 %v1005_v0 }
 0x87b   : > { %v452_v32 = vpop.f32.mrf.mxu2 }
 0x87c   : > { %v453_v33 = vadd.f32 %v452_v32, %v1045_v8 }
 0x87e   : > { %v455_v35 = vmul.f32 0.017857144, %v453_v33  ;;  %v482_v36 = vmul.f32 2.0, %v453_v33 }
 0x880   : > { %v456_v37 = vadd.f32 %v455_v35, %v381_v22  ;;  %v483_v38 = vadd.f32 %v482_v36, %v481_v34 }
 0x882   : > { %938 = vmatmul.msk.f32.vlgmr.msrb.gmra.mxu3 %vm66_vm2, %v456_v37 }
 0x883   : > { %678 = vmatpush.msrb.mxu3 %v1040_v7 }
 0x885   : > { %679 = vmatpush.msrb.mxu3 %v1035_v6 }
 0x887   : > { %680 = vmatpush.msrb.mxu3 %v1030_v5 }
 0x889   : > { %681 = vmatpush.msrb.mxu3 %v1025_v4 }
 0x88b   : > { %682 = vmatpush.msrb.mxu3 %v1020_v3 }
 0x88d   : > { %683 = vmatpush.msrb.mxu3 %v1015_v2 }
 0x88f   : > { %684 = vmatpush.msrb.mxu3 %v1010_v1 }
 0x891   : > { %685 = vmatpush.msrb.mxu3 %v1005_v0 }
 0x905   : > { %v477_v39 = vpop.f32.mrf.mxu3 }
 0x906   : > { %v478_v40 = vadd.f32 %v477_v39, %v1045_v8 }
 0x908   : > { %v484_v41 = vadd.f32 %v483_v38, %v478_v40 }
 0x90a   : > { %v485_v42 = vmul.f32 0.0029761905, %v484_v41 }
 0x90c   : > { %v486_v43 = vadd.f32 %v485_v42, %v381_v22 }
 0x90e   : > { %939 = vmatmul.msk.f32.vlgmr.msra.gmra.mxu0 %vm66_vm2, %v486_v43 }
 0x90f   : > { %708 = vmatpush.msra.mxu0 %v1040_v7 }
 0x911   : > { %709 = vmatpush.msra.mxu0 %v1035_v6 }
 0x913   : > { %710 = vmatpush.msra.mxu0 %v1030_v5 }
 0x915   : > { %711 = vmatpush.msra.mxu0 %v1025_v4 }
 0x917   : > { %712 = vmatpush.msra.mxu0 %v1020_v3 }
 0x919   : > { %713 = vmatpush.msra.mxu0 %v1015_v2 }
 0x91b   : > { %714 = vmatpush.msra.mxu0 %v1010_v1 }
 0x91d   : > { %715 = vmatpush.msra.mxu0 %v1005_v0 }
 0x98b   : > { %v507_v44 = vpop.f32.mrf.mxu0 }
 0x98c   : > { %v508_v45 = vadd.f32 %v507_v44, %v1045_v8 }
 0x98e   : > { %v510_v46 = vmul.f32 0.008928572, %v508_v45 }
 0x990   : > { %v511_v47 = vadd.f32 %v510_v46, %v486_v43 }
 0x992   : > { %940 = vmatmul.msk.f32.vlgmr.msra.gmra.mxu1 %vm66_vm2, %v511_v47 }
 0x993   : > { %733 = vmatpush.msra.mxu1 %v1040_v7 }
 0x995   : > { %734 = vmatpush.msra.mxu1 %v1035_v6 }
 0x997   : > { %735 = vmatpush.msra.mxu1 %v1030_v5 }
 0x999   : > { %736 = vmatpush.msra.mxu1 %v1025_v4 }
 0x99b   : > { %737 = vmatpush.msra.mxu1 %v1020_v3 }
 0x99d   : > { %738 = vmatpush.msra.mxu1 %v1015_v2 }
 0x99f   : > { %739 = vmatpush.msra.mxu1 %v1010_v1 }
 0x9a1   : > { %740 = vmatpush.msra.mxu1 %v1005_v0 }
 0xa0f   : > { %v532_v48 = vpop.f32.mrf.mxu1 }
 0xa10   : > { %v533_v49 = vadd.f32 %v532_v48, %v1045_v8 }
 0xa12   : > { %v535_v50 = vmul.f32 0.008928572, %v533_v49  ;;  %v585_v52 = vmul.f32 2.0, %v533_v49 }
 0xa14   : > { %v536_v51 = vadd.f32 %v535_v50, %v486_v43  ;;  %v586_v55 = vadd.f32 %v585_v52, %v508_v45 }
 0xa16   : > { %941 = vmatmul.msk.f32.vlgmr.msra.gmra.mxu2 %vm66_vm2, %v536_v51 }
 0xa17   : > { %758 = vmatpush.msra.mxu2 %v1040_v7 }
 0xa19   : > { %759 = vmatpush.msra.mxu2 %v1035_v6 }
 0xa1b   : > { %760 = vmatpush.msra.mxu2 %v1030_v5 }
 0xa1d   : > { %761 = vmatpush.msra.mxu2 %v1025_v4 }
 0xa1f   : > { %762 = vmatpush.msra.mxu2 %v1020_v3 }
 0xa21   : > { %763 = vmatpush.msra.mxu2 %v1015_v2 }
 0xa23   : > { %764 = vmatpush.msra.mxu2 %v1010_v1 }
 0xa25   : > { %765 = vmatpush.msra.mxu2 %v1005_v0 }
 0xa99   : > { %v557_v53 = vpop.f32.mrf.mxu2 }
 0xa9a   : > { %v558_v54 = vadd.f32 %v557_v53, %v1045_v8 }
 0xa9c   : > { %v560_v56 = vmul.f32 0.017857144, %v558_v54  ;;  %v587_v57 = vmul.f32 2.0, %v558_v54 }
 0xa9e   : > { %v561_v58 = vadd.f32 %v560_v56, %v486_v43  ;;  %v588_v59 = vadd.f32 %v587_v57, %v586_v55 }
 0xaa0   : > { %942 = vmatmul.msk.f32.vlgmr.msra.gmra.mxu3 %vm66_vm2, %v561_v58 }
 0xaa1   : > { %783 = vmatpush.msra.mxu3 %v1040_v7 }
 0xaa3   : > { %784 = vmatpush.msra.mxu3 %v1035_v6 }
 0xaa5   : > { %785 = vmatpush.msra.mxu3 %v1030_v5 }
 0xaa7   : > { %786 = vmatpush.msra.mxu3 %v1025_v4 }
 0xaa9   : > { %787 = vmatpush.msra.mxu3 %v1020_v3 }
 0xaab   : > { %788 = vmatpush.msra.mxu3 %v1015_v2 }
 0xaad   : > { %789 = vmatpush.msra.mxu3 %v1010_v1 }
 0xaaf   : > { %790 = vmatpush.msra.mxu3 %v1005_v0 }
 0xb23   : > { %v582_v60 = vpop.f32.mrf.mxu3 }
 0xb24   : > { %v583_v61 = vadd.f32 %v582_v60, %v1045_v8 }
 0xb26   : > { %v589_v62 = vadd.f32 %v588_v59, %v583_v61 }
 0xb28   : > { %v590_v63 = vmul.f32 0.0029761905, %v589_v62 }
 0xb2a   : > { %v591_v9 = vadd.f32 %v590_v63, %v486_v43 }
 0xb2c   : > { %943 = vmatmul.msk.f32.vlgmr.msrb.gmra.mxu0 %vm66_vm2, %v591_v9 }
 0xb2d   : > { %813 = vmatpush.msrb.mxu0 %v1040_v7 }
 0xb2f   : > { %814 = vmatpush.msrb.mxu0 %v1035_v6 }
 0xb31   : > { %815 = vmatpush.msrb.mxu0 %v1030_v5 }
 0xb33   : > { %816 = vmatpush.msrb.mxu0 %v1025_v4 }
 0xb35   : > { %817 = vmatpush.msrb.mxu0 %v1020_v3 }
 0xb37   : > { %818 = vmatpush.msrb.mxu0 %v1015_v2 }
 0xb39   : > { %819 = vmatpush.msrb.mxu0 %v1010_v1 }
 0xb3b   : > { %820 = vmatpush.msrb.mxu0 %v1005_v0 }
 0xba9   : > { %v612_v10 = vpop.f32.mrf.mxu0 }
 0xbaa   : > { %v613_v11 = vadd.f32 %v612_v10, %v1045_v8 }
 0xbac   : > { %v615_v12 = vmul.f32 0.008928572, %v613_v11 }
 0xbae   : > { %v616_v13 = vadd.f32 %v615_v12, %v591_v9 }
 0xbb0   : > { %944 = vmatmul.msk.f32.vlgmr.msrb.gmra.mxu1 %vm66_vm2, %v616_v13 }
 0xbb1   : > { %838 = vmatpush.msrb.mxu1 %v1040_v7 }
 0xbb3   : > { %839 = vmatpush.msrb.mxu1 %v1035_v6 }
 0xbb5   : > { %840 = vmatpush.msrb.mxu1 %v1030_v5 }
 0xbb7   : > { %841 = vmatpush.msrb.mxu1 %v1025_v4 }
 0xbb9   : > { %842 = vmatpush.msrb.mxu1 %v1020_v3 }
 0xbbb   : > { %843 = vmatpush.msrb.mxu1 %v1015_v2 }
 0xbbd   : > { %844 = vmatpush.msrb.mxu1 %v1010_v1 }
 0xbbf   : > { %845 = vmatpush.msrb.mxu1 %v1005_v0 }
 0xc2d   : > { %v637_v14 = vpop.f32.mrf.mxu1 }
 0xc2e   : > { %v638_v15 = vadd.f32 %v637_v14, %v1045_v8 }
 0xc30   : > { %v640_v16 = vmul.f32 0.008928572, %v638_v15  ;;  %v690_v18 = vmul.f32 2.0, %v638_v15 }
 0xc32   : > { %v641_v17 = vadd.f32 %v640_v16, %v591_v9  ;;  %v691_v21 = vadd.f32 %v690_v18, %v613_v11 }
 0xc34   : > { %945 = vmatmul.msk.f32.vlgmr.msrb.gmra.mxu2 %vm66_vm2, %v641_v17 }
 0xc35   : > { %863 = vmatpush.msrb.mxu2 %v1040_v7 }
 0xc37   : > { %864 = vmatpush.msrb.mxu2 %v1035_v6 }
 0xc39   : > { %865 = vmatpush.msrb.mxu2 %v1030_v5 }
 0xc3b   : > { %866 = vmatpush.msrb.mxu2 %v1025_v4 }
 0xc3d   : > { %867 = vmatpush.msrb.mxu2 %v1020_v3 }
 0xc3f   : > { %868 = vmatpush.msrb.mxu2 %v1015_v2 }
 0xc41   : > { %869 = vmatpush.msrb.mxu2 %v1010_v1 }
 0xc43   : > { %870 = vmatpush.msrb.mxu2 %v1005_v0 }
 0xcb7   : > { %v662_v19 = vpop.f32.mrf.mxu2 }
 0xcb8   : > { %v663_v20 = vadd.f32 %v662_v19, %v1045_v8 }
 0xcba   : > { %v665_v22 = vmul.f32 0.017857144, %v663_v20  ;;  %v692_v23 = vmul.f32 2.0, %v663_v20 }
 0xcbc   : > { %v666_v24 = vadd.f32 %v665_v22, %v591_v9  ;;  %v693_v25 = vadd.f32 %v692_v23, %v691_v21 }
 0xcbe   : > { %946 = vmatmul.msk.f32.vlgmr.msrb.gmra.mxu3 %vm66_vm2, %v666_v24 }
 0xcbf   : > { %888 = vmatpush.msrb.mxu3 %v1040_v7 }
 0xcc1   : > { %889 = vmatpush.msrb.mxu3 %v1035_v6 }
 0xcc3   : > { %890 = vmatpush.msrb.mxu3 %v1030_v5 }
 0xcc5   : > { %891 = vmatpush.msrb.mxu3 %v1025_v4 }
 0xcc7   : > { %892 = vmatpush.msrb.mxu3 %v1020_v3 }
 0xcc9   : > { %893 = vmatpush.msrb.mxu3 %v1015_v2 }
 0xccb   : > { %894 = vmatpush.msrb.mxu3 %v1010_v1 }
 0xccd   : > { %895 = vmatpush.msrb.mxu3 %v1005_v0 }
 0xd41   : > { %v687_v26 = vpop.f32.mrf.mxu3 }
 0xd42   : > { %v688_v27 = vadd.f32 %v687_v26, %v1045_v8 }
 0xd44   : > { %v694_v28 = vadd.f32 %v693_v25, %v688_v27 }
 0xd46   : > { %v695_v29 = vmul.f32 0.0029761905, %v694_v28 }
 0xd48   : > { %v696_v30 = vadd.f32 %v695_v29, %v591_v9 }
 0xd4a   : > { %947 = vmatmul.msk.f32.vlgmr.msra.gmra.mxu0 %vm66_vm2, %v696_v30 }
 0xdc7   : > { %v717_v31 = vpop.f32.mrf.mxu0 }
 0xdc8   : > { %v718_v32 = vadd.f32 %v717_v31, %v1045_v8 }
 0xdca   : > { %v720_v33 = vmul.f32 0.008928572, %v718_v32 }
 0xdcc   : > { %v721_v34 = vadd.f32 %v720_v33, %v696_v30 }
 0xdce   : > { %948 = vmatmul.msk.f32.vlgmr.msra.gmra.mxu1 %vm66_vm2, %v721_v34 }
 0xe4b   : > { %v742_v35 = vpop.f32.mrf.mxu1 }
 0xe4c   : > { %v743_v36 = vadd.f32 %v742_v35, %v1045_v8 }
 0xe4e   : > { %v745_v37 = vmul.f32 0.008928572, %v743_v36  ;;  %v795_v39 = vmul.f32 2.0, %v743_v36 }
 0xe50   : > { %v746_v38 = vadd.f32 %v745_v37, %v696_v30  ;;  %v796_v42 = vadd.f32 %v795_v39, %v718_v32 }
 0xe52   : > { %949 = vmatmul.msk.f32.vlgmr.msra.gmra.mxu2 %vm66_vm2, %v746_v38 }
 0xed5   : > { %v767_v40 = vpop.f32.mrf.mxu2 }
 0xed6   : > { %v768_v41 = vadd.f32 %v767_v40, %v1045_v8 }
 0xed8   : > { %v770_v43 = vmul.f32 0.017857144, %v768_v41  ;;  %v797_v44 = vmul.f32 2.0, %v768_v41 }
 0xeda   : > { %v771_v45 = vadd.f32 %v770_v43, %v696_v30  ;;  %v798_v46 = vadd.f32 %v797_v44, %v796_v42 }
 0xedc   : > { %950 = vmatmul.msk.f32.vlgmr.msra.gmra.mxu3 %vm66_vm2, %v771_v45 }
 0xf5f   : > { %v792_v47 = vpop.f32.mrf.mxu3 }
 0xf60   : > { %v793_v48 = vadd.f32 %v792_v47, %v1045_v8 }
 0xf62   : > { %v799_v49 = vadd.f32 %v798_v46, %v793_v48 }
 0xf64   : > { %v800_v50 = vmul.f32 0.0029761905, %v799_v49 }
 0xf66   : > { %v801_v51 = vadd.f32 %v800_v50, %v696_v30 }
 0xf68   : > { %951 = vmatmul.msk.f32.vlgmr.msrb.gmra.mxu0 %vm66_vm2, %v801_v51 }
 0xfe5   : > { %v822_v52 = vpop.f32.mrf.mxu0 }
 0xfe6   : > { %v823_v53 = vadd.f32 %v822_v52, %v1045_v8 }
 0xfe8   : > { %v825_v54 = vmul.f32 0.008928572, %v823_v53 }
 0xfea   : > { %v826_v55 = vadd.f32 %v825_v54, %v801_v51 }
 0xfec   : > { %952 = vmatmul.msk.f32.vlgmr.msrb.gmra.mxu1 %vm66_vm2, %v826_v55 }
0x1069   : > { %v847_v56 = vpop.f32.mrf.mxu1 }
0x106a   : > { %v848_v57 = vadd.f32 %v847_v56, %v1045_v8 }
0x106c   : > { %v850_v58 = vmul.f32 0.008928572, %v848_v57  ;;  %v900_v60 = vmul.f32 2.0, %v848_v57 }
0x106e   : > { %v851_v59 = vadd.f32 %v850_v58, %v801_v51  ;;  %v901_v63 = vadd.f32 %v900_v60, %v823_v53 }
0x1070   : > { %953 = vmatmul.msk.f32.vlgmr.msrb.gmra.mxu2 %vm66_vm2, %v851_v59 }
0x10f3   : > { %v872_v61 = vpop.f32.mrf.mxu2 }
0x10f4   : > { %v873_v62 = vadd.f32 %v872_v61, %v1045_v8 }
0x10f6   : > { %v875_v9 = vmul.f32 0.017857144, %v873_v62  ;;  %v902_v10 = vmul.f32 2.0, %v873_v62 }
0x10f8   : > { %v876_v11 = vadd.f32 %v875_v9, %v801_v51  ;;  %v903_v12 = vadd.f32 %v902_v10, %v901_v63 }
0x10fa   : > { %954 = vmatmul.msk.f32.vlgmr.msrb.gmra.mxu3 %vm66_vm2, %v876_v11 }
0x117d   : > { %v897_v13 = vpop.f32.mrf.mxu3 }
0x117e   : > { %v898_v14 = vadd.f32 %v897_v13, %v1045_v8 }
0x1180   : > { %v904_v15 = vadd.f32 %v903_v12, %v898_v14 }
0x1182   : > { %v905_v16 = vmul.f32 0.0029761905, %v904_v15  ;;  %62 = sbr.rel (!%p60_p0) target bundleno = 135 (0x87), region = 49 }
0x1184   : > { %v906_v17 = vadd.f32 %v905_v16, %v801_v51 }
0x1186   : > { %955 = vst.msk [vmem:[%s1087_s2 + $0x1] sm:$0x1] %vm56_vm1, %v906_v17 }

</bundles_post_ra>
